<compile_context>
chip_gen: v5e
topology: v5e:2x2
jax: 0.10.0
libtpu: 0.0.40
codegen_flags: <defaults>
</compile_context>

<pallas_src>
import functools

import jax
import jax.numpy as jnp
from jax import lax
from jax.experimental import pallas as pl
from jax.experimental.pallas import tpu as pltpu


def conv3x3_to_band(w_hwio, W, scale=None):
    """Fold a 3x3 HWIO conv weight (+ optional per-out-channel scale) into a
    banded matrix of shape (3*W*Cin, W*Cout).

    band[dy*W*Cin + w_in*Cin + ci, w_out*Cout + co] =
        w_hwio[dy, w_in - w_out + 1, ci, co]     if w_in - w_out + 1 in {0,1,2}
        0                                        otherwise
    which encodes the dx taps AND the zero padding along W.
    """
    kh, kw, Cin, Cout = w_hwio.shape
    w = w_hwio.astype(jnp.float32)
    if scale is not None:
        w = w * scale.reshape(1, 1, 1, Cout).astype(jnp.float32)
    w_in = jnp.arange(W)[:, None]
    w_out = jnp.arange(W)[None, :]
    dx = w_in - w_out + 1                               # (W, W)
    valid = (dx >= 0) & (dx < kw)
    dx_c = jnp.clip(dx, 0, kw - 1)
    blocks = w[:, dx_c, :, :]                           # (kh, W, W, Cin, Cout)
    blocks = blocks * valid[None, :, :, None, None].astype(jnp.float32)
    band = jnp.transpose(blocks, (0, 1, 3, 2, 4))       # (kh, W_in, Cin, W_out, Cout)
    return band.reshape(kh * W * Cin, W * Cout)


def basic_block_kernel(x_ref, w1_ref, w2_ref, bias_ref, o_ref, *, H, WC_in, WC_out):
    """One batch image per grid step.

    x_ref    : (H, W*Cin)          lane-dense activation (residual too)
    w1_ref   : (3*W*Cin,  W*Cmid)  banded conv1 weight, BN1 scale folded in
    w2_ref   : (3*W*Cmid, W*Cmid)  banded conv2 weight, BN2 scale folded in
    bias_ref : (2, W*Cmid)         row 0 = bn1 bias, row 1 = bn2 bias (per lane)
    o_ref    : (H, W*Cmid)
    """
    x = x_ref[...]                                      # (H, WC_in) f32
    zin = jnp.zeros((1, WC_in), jnp.float32)

    # dy taps via sublane shift (zero rows at the H boundary), fused along K.
    lhs1 = jnp.concatenate(
        [
            jnp.concatenate([zin, x[:H - 1, :]], axis=0),   # row h -> x[h-1]  (dy=0)
            x,                                              # row h -> x[h]    (dy=1)
            jnp.concatenate([x[1:, :], zin], axis=0),       # row h -> x[h+1]  (dy=2)
        ],
        axis=-1,
    )                                                       # (H, 3*WC_in)

    # conv1 + bn1 + relu  (scale already folded into w1)
    mid = jnp.dot(lhs1, w1_ref[...], preferred_element_type=jnp.float32)
    mid = jnp.maximum(mid + bias_ref[0:1, :], 0.0)          # (H, WC_out)

    zmid = jnp.zeros((1, WC_out), jnp.float32)
    lhs2 = jnp.concatenate(
        [
            jnp.concatenate([zmid, mid[:H - 1, :]], axis=0),
            mid,
            jnp.concatenate([mid[1:, :], zmid], axis=0),
        ],
        axis=-1,
    )                                                       # (H, 3*WC_out)

    # conv2 + bn2 + residual + relu
    out = jnp.dot(lhs2, w2_ref[...], preferred_element_type=jnp.float32)
    out = jnp.maximum(out + bias_ref[1:2, :] + x, 0.0)      # Cin == Cmid
    o_ref[...] = out.astype(o_ref.dtype)


def basic_block(x_nchw, w1_hwio, w2_hwio, s1, b1, s2, b2):
    """Fused BasicBlock (stride=1, no downsample). Input/output are NCHW."""
    N, C, H, W = x_nchw.shape
    Cmid = w1_hwio.shape[-1]
    assert C == Cmid, "identity residual requires inplanes == planes"
    WC_in = W * C
    WC_out = W * Cmid

    s1 = s1.reshape(-1).astype(jnp.float32)
    b1 = b1.reshape(-1).astype(jnp.float32)
    s2 = s2.reshape(-1).astype(jnp.float32)
    b2 = b2.reshape(-1).astype(jnp.float32)

    # NCHW -> (N, H, W*C) lane-dense layout (single boundary transpose).
    x = jnp.transpose(x_nchw, (0, 2, 3, 1)).reshape(N, H, WC_in)
    x = x.astype(jnp.float32)

    # One-time weight prep: banded matrices with BN scale folded in.
    w1_band = conv3x3_to_band(w1_hwio, W, scale=s1)         # (3*WC_in,  WC_out)
    w2_band = conv3x3_to_band(w2_hwio, W, scale=s2)         # (3*WC_out, WC_out)
    bias = jnp.stack([jnp.tile(b1, W), jnp.tile(b2, W)], axis=0)  # (2, WC_out)

    kern = functools.partial(basic_block_kernel, H=H, WC_in=WC_in, WC_out=WC_out)

    out = pl.pallas_call(
        kern,
        out_shape=jax.ShapeDtypeStruct((N, H, WC_out), jnp.float32),
        grid_spec=pltpu.PrefetchScalarGridSpec(
            num_scalar_prefetch=0,
            grid=(N,),
            in_specs=[
                pl.BlockSpec((None, H, WC_in), lambda n: (n, 0, 0)),
                pl.BlockSpec((3 * WC_in, WC_out), lambda n: (0, 0)),
                pl.BlockSpec((3 * WC_out, WC_out), lambda n: (0, 0)),
                pl.BlockSpec((2, WC_out), lambda n: (0, 0)),
            ],
            out_specs=pl.BlockSpec((None, H, WC_out), lambda n: (n, 0, 0)),
        ),
        compiler_params=pltpu.CompilerParams(
            dimension_semantics=("parallel",),
            vmem_limit_bytes=32 * 1024 * 1024),
    )(x, w1_band, w2_band, bias)

    out = out.reshape(N, H, W, Cmid)
    return jnp.transpose(out, (0, 3, 1, 2))                 # NCHW


def reference_basic_block(x_nchw, w1_hwio, w2_hwio, s1, b1, s2, b2):
    """Pure-JAX reference (lax conv) for correctness checking."""
    x = jnp.transpose(x_nchw, (0, 2, 3, 1)).astype(jnp.float32)
    dn = ("NHWC", "HWIO", "NHWC")
    s1 = s1.reshape(1, 1, 1, -1); b1 = b1.reshape(1, 1, 1, -1)
    s2 = s2.reshape(1, 1, 1, -1); b2 = b2.reshape(1, 1, 1, -1)
    o = lax.conv_general_dilated(x, w1_hwio, (1, 1), "SAME",
                                 dimension_numbers=dn)
    o = jnp.maximum(o * s1 + b1, 0.0)
    o = lax.conv_general_dilated(o, w2_hwio, (1, 1), "SAME",
                                 dimension_numbers=dn)
    o = o * s2 + b2
    o = jnp.maximum(o + x, 0.0)
    return jnp.transpose(o, (0, 3, 1, 2))


if __name__ == "__main__":
    # Shapes consistent with BasicBlock(inplanes=8, planes=8, stride=1);
    # W * C = 128 makes the lane dimension exactly one full vreg width.
    N, C, H, W = 2, 8, 16, 16
    planes = C
    eps = 1e-5

    key = jax.random.PRNGKey(0)
    k = jax.random.split(key, 10)

    x = jax.random.normal(k[0], (N, C, H, W), jnp.float32)

    # conv weights (PyTorch layout is OIHW; build HWIO directly, deterministic)
    w1 = jax.random.normal(k[1], (3, 3, C, planes), jnp.float32) * 0.1
    w2 = jax.random.normal(k[2], (3, 3, planes, planes), jnp.float32) * 0.1

    # BatchNorm parameters (eval mode), folded into scale/bias
    gamma1 = jax.random.uniform(k[3], (planes,), jnp.float32, 0.5, 1.5)
    beta1 = jax.random.normal(k[4], (planes,), jnp.float32) * 0.1
    mean1 = jax.random.normal(k[5], (planes,), jnp.float32) * 0.1
    var1 = jax.random.uniform(k[6], (planes,), jnp.float32, 0.5, 1.5)
    gamma2 = jax.random.uniform(k[7], (planes,), jnp.float32, 0.5, 1.5)
    beta2 = jax.random.normal(k[8], (planes,), jnp.float32) * 0.1
    mean2 = jax.random.normal(k[9], (planes,), jnp.float32) * 0.1
    var2 = jnp.ones((planes,), jnp.float32)

    s1 = gamma1 / jnp.sqrt(var1 + eps)
    b1 = beta1 - mean1 * s1
    s2 = gamma2 / jnp.sqrt(var2 + eps)
    b2 = beta2 - mean2 * s2

    out = basic_block(x, w1, w2, s1, b1, s2, b2)
    out = jax.block_until_ready(out)

    ref = reference_basic_block(x, w1, w2, s1, b1, s2, b2)
    ref = jax.block_until_ready(ref)

    assert out.shape == (N, C, H, W)
    assert jnp.allclose(out, ref, rtol=1e-4, atol=1e-4), (
        float(jnp.max(jnp.abs(out - ref))))

    print("KERNEL_OK")
</pallas_src>

<mosaic_0001>
module attributes {stable_mosaic.version = 11 : i64} {
  func.func @basic_block_kernel(%arg0: i32, %arg1: memref<1x16x128xf32, #tpu.memory_space<vmem>>, %arg2: memref<384x128xf32, #tpu.memory_space<vmem>>, %arg3: memref<384x128xf32, #tpu.memory_space<vmem>>, %arg4: memref<2x128xf32, #tpu.memory_space<vmem>>, %arg5: memref<1x16x128xf32, #tpu.memory_space<vmem>>) attributes {dimension_semantics = [#tpu.dimension_semantics<parallel>], iteration_bounds = array<i64: 2>, scalar_prefetch = 0 : i64, scratch_operands = 0 : i64, tpu.core_type = #tpu.core_type<tc>, window_params = [{transform_indices = @transform_0, window_bounds = array<i64: 1, 16, 128>}, {pipeline_mode = #tpu.pipeline_mode<synchronous>, transform_indices = @transform_1, window_bounds = array<i64: 384, 128>}, {pipeline_mode = #tpu.pipeline_mode<synchronous>, transform_indices = @transform_2, window_bounds = array<i64: 384, 128>}, {pipeline_mode = #tpu.pipeline_mode<synchronous>, transform_indices = @transform_3, window_bounds = array<i64: 2, 128>}, {transform_indices = @transform_4, window_bounds = array<i64: 1, 16, 128>}]} {
    %c0 = arith.constant 0 : index
    %c0_0 = arith.constant 0 : index
    %c0_1 = arith.constant 0 : index
    %0 = vector.load %arg1[%c0, %c0_0, %c0_1] : memref<1x16x128xf32, #tpu.memory_space<vmem>>, vector<1x16x128xf32>
    %1 = vector.shape_cast %0 : vector<1x16x128xf32> to vector<16x128xf32>
    %cst = arith.constant 0.000000e+00 : f32
    %2 = vector.broadcast %cst : f32 to vector<1x128xf32>
    %3 = vector.extract_strided_slice %1 {offsets = [0, 0], sizes = [15, 128], strides = [1, 1]} : vector<16x128xf32> to vector<15x128xf32>
    %4 = tpu.concatenate %2, %3 in 0 : vector<1x128xf32>, vector<15x128xf32> -> vector<16x128xf32>
    %5 = vector.extract_strided_slice %1 {offsets = [1, 0], sizes = [15, 128], strides = [1, 1]} : vector<16x128xf32> to vector<15x128xf32>
    %6 = tpu.concatenate %5, %2 in 0 : vector<15x128xf32>, vector<1x128xf32> -> vector<16x128xf32>
    %7 = tpu.concatenate %4, %1, %6 in 1 : vector<16x128xf32>, vector<16x128xf32>, vector<16x128xf32> -> vector<16x384xf32>
    %c0_2 = arith.constant 0 : index
    %c0_3 = arith.constant 0 : index
    %8 = vector.load %arg2[%c0_2, %c0_3] : memref<384x128xf32, #tpu.memory_space<vmem>>, vector<384x128xf32>
    %cst_4 = arith.constant dense<0.000000e+00> : vector<16x128xf32>
    %9 = tpu.matmul %7, %8, %cst_4 {dimension_numbers = #tpu.dot_dimension_numbers<[1], [0], [0], [1], [0, 0, 1, 1], [], []>} : vector<16x384xf32>, vector<384x128xf32>, vector<16x128xf32> -> vector<16x128xf32>
    %c0_5 = arith.constant 0 : index
    %c0_6 = arith.constant 0 : index
    %10 = vector.load %arg4[%c0_5, %c0_6] : memref<2x128xf32, #tpu.memory_space<vmem>>, vector<1x128xf32>
    %11 = vector.broadcast %10 : vector<1x128xf32> to vector<16x128xf32>
    %12 = arith.addf %9, %11 : vector<16x128xf32>
    %cst_7 = arith.constant 0.000000e+00 : f32
    %13 = vector.broadcast %cst_7 : f32 to vector<16x128xf32>
    %14 = arith.maximumf %12, %13 : vector<16x128xf32>
    %cst_8 = arith.constant 0.000000e+00 : f32
    %15 = vector.broadcast %cst_8 : f32 to vector<1x128xf32>
    %16 = vector.extract_strided_slice %14 {offsets = [0, 0], sizes = [15, 128], strides = [1, 1]} : vector<16x128xf32> to vector<15x128xf32>
    %17 = tpu.concatenate %15, %16 in 0 : vector<1x128xf32>, vector<15x128xf32> -> vector<16x128xf32>
    %18 = vector.extract_strided_slice %14 {offsets = [1, 0], sizes = [15, 128], strides = [1, 1]} : vector<16x128xf32> to vector<15x128xf32>
    %19 = tpu.concatenate %18, %15 in 0 : vector<15x128xf32>, vector<1x128xf32> -> vector<16x128xf32>
    %20 = tpu.concatenate %17, %14, %19 in 1 : vector<16x128xf32>, vector<16x128xf32>, vector<16x128xf32> -> vector<16x384xf32>
    %c0_9 = arith.constant 0 : index
    %c0_10 = arith.constant 0 : index
    %21 = vector.load %arg3[%c0_9, %c0_10] : memref<384x128xf32, #tpu.memory_space<vmem>>, vector<384x128xf32>
    %cst_11 = arith.constant dense<0.000000e+00> : vector<16x128xf32>
    %22 = tpu.matmul %20, %21, %cst_11 {dimension_numbers = #tpu.dot_dimension_numbers<[1], [0], [0], [1], [0, 0, 1, 1], [], []>} : vector<16x384xf32>, vector<384x128xf32>, vector<16x128xf32> -> vector<16x128xf32>
    %c1 = arith.constant 1 : index
    %c0_12 = arith.constant 0 : index
    %23 = vector.load %arg4[%c1, %c0_12] : memref<2x128xf32, #tpu.memory_space<vmem>>, vector<1x128xf32>
    %24 = vector.broadcast %23 : vector<1x128xf32> to vector<16x128xf32>
    %25 = arith.addf %22, %24 : vector<16x128xf32>
    %26 = arith.addf %25, %1 : vector<16x128xf32>
    %cst_13 = arith.constant 0.000000e+00 : f32
    %27 = vector.broadcast %cst_13 : f32 to vector<16x128xf32>
    %28 = arith.maximumf %26, %27 : vector<16x128xf32>
    %c0_14 = arith.constant 0 : index
    %c0_15 = arith.constant 0 : index
    %c0_16 = arith.constant 0 : index
    %29 = vector.load %arg5[%c0_14, %c0_15, %c0_16] : memref<1x16x128xf32, #tpu.memory_space<vmem>>, vector<1x16x128xf32>
    %30 = vector.shape_cast %29 : vector<1x16x128xf32> to vector<16x128xf32>
    %31 = vector.shape_cast %28 : vector<16x128xf32> to vector<1x16x128xf32>
    tpu.vector_store %arg5[%c0_14, %c0_15, %c0_16], %31 {strides = array<i32>} : memref<1x16x128xf32, #tpu.memory_space<vmem>>, vector<1x16x128xf32>,
    return
  }
  func.func @transform_0(%arg0: i32) -> (i32, i32, i32) {
    %c0_i32 = arith.constant 0 : i32
    %c0_i32_0 = arith.constant 0 : i32
    %c0_i32_1 = arith.constant 0 : i32
    return %arg0, %c0_i32, %c0_i32_0 : i32, i32, i32
  }
  func.func @transform_1(%arg0: i32) -> (i32, i32) {
    %c0_i32 = arith.constant 0 : i32
    %c0_i32_0 = arith.constant 0 : i32
    %c0_i32_1 = arith.constant 0 : i32
    return %c0_i32, %c0_i32_0 : i32, i32
  }
  func.func @transform_2(%arg0: i32) -> (i32, i32) {
    %c0_i32 = arith.constant 0 : i32
    %c0_i32_0 = arith.constant 0 : i32
    %c0_i32_1 = arith.constant 0 : i32
    return %c0_i32, %c0_i32_0 : i32, i32
  }
  func.func @transform_3(%arg0: i32) -> (i32, i32) {
    %c0_i32 = arith.constant 0 : i32
    %c0_i32_0 = arith.constant 0 : i32
    %c0_i32_1 = arith.constant 0 : i32
    return %c0_i32, %c0_i32_0 : i32, i32
  }
  func.func @transform_4(%arg0: i32) -> (i32, i32, i32) {
    %c0_i32 = arith.constant 0 : i32
    %c0_i32_0 = arith.constant 0 : i32
    %c0_i32_1 = arith.constant 0 : i32
    return %arg0, %c0_i32, %c0_i32_0 : i32, i32, i32
  }
}

</mosaic_0001>

<bundles_post_ra>
// kernel: tpu_custom_call.1
= control target key start
LH: loop header
LB: loop body
LE: loop exit
PB: predicated region body
PF: predicated region fallthrough
CT: control target
= control target key end

     0   :  { %9 = vsyncpa [#allocation3], 0  ;;  %s1152_s0 = inlined_call_operand.hbm [shape: f32[2,16,128], index: 0, kind: input, shape index: {}]   ;;  %s1153_s1 = inlined_call_operand.hbm [shape: f32[384,128], index: 1, kind: input, shape index: {}]   ;;  %s1154_s2 = inlined_call_operand.hbm [shape: f32[384,128], index: 2, kind: input, shape index: {}]   ;;  %s1155_s3 = inlined_call_operand.vmem [shape: f32[2,128], index: 3, kind: input, shape index: {}]   ;;  %s1156_s4 = inlined_call_operand.hbm [shape: f32[2,16,128], index: 4, kind: output, shape index: {}]  }
   0x1   :  { %11 = vsyncpa [#allocation3 + $0x1], 0 }
   0x2   :  { %12 = vsyncpa [#allocation6], 0 }
   0x3   :  { %13 = vsyncpa [#allocation4], 0 }
   0x4   :  { %15 = vsyncpa [#allocation4 + $0x1], 0  ;;  %s961_s15 = smov 0   ;;  %s963_s16 = smov 0  }
   0x5   :  { %s965_s17 = smov 0   ;;  %s967_s18 = smov 0  }
   0x6 LB: > { %s982_s19 = sadd.s32 4294967295, %s928_s18   ;;  %s637_s20 = sadd.s32 4294967294, %s928_s18   ;;  %s928_s18 = sphi %s967_s18, %s1168_s18   ;;  %s924_s17 = sphi %s965_s17, %s1167_s17   ;;  %s920_s16 = sphi %s963_s16, %s1166_s16   ;;  %s916_s15 = sphi %s961_s15, %s1165_s15  }
   0x7   : > { %p41_p0 = scmp.ne.s32.totalorder %s920_s16, %s916_s15  ;;  %p42_p1 = scmp.eq.s32.totalorder %s982_s19, 0 }
   0x8   : > { %p128_p2 = scmp.eq.s32.totalorder %s982_s19, 1  ;;  %p134_p3 = scmp.eq.s32.totalorder %s637_s20, 1 }
   0x9   : > { %p991_p4 = por %p42_p1, %p41_p0  ;;  %p638_p5 = scmp.ge.s32.totalorder %s928_s18, 1 }
   0xa   : > { %p996_p6 = por %p134_p3, %p41_p0  ;;  %p141_p7 = scmp.lt.s32.totalorder %s928_s18, 3 }
   0xb   : > { %s152_s25 = sshll.u32 %s1153_s1, 4  ;;  %s930_s27 = smov [#allocation5]   ;;  %s153_s25 = int_to_ptr.hbm [resolvable:$true] %s152_s25 }
   0xc   : > { %p1004_p8 = pnand %p638_p5, %p141_p7  ;;  %s154_s28 = sshll.u32 %s930_s27, 4  ;;  %s155_s28 = int_to_ptr.vmem [resolvable:$true] %s154_s28 }
   0xd   : > { %s166_s5 = sshll.u32 %s1154_s2, 4  ;;  %s931_s6 = smov 128   ;;  %s167_s5 = int_to_ptr.hbm [resolvable:$true] %s166_s5 }
   0xe   : > { %p707_p9 = pneg %p1004_p8  ;;  %s932_s7 = smov 8  }
   0xf   : > { %s933_s8 = smov [#allocation7]   ;;  %s1023_s10 = sadd.s32 1, %s928_s18  }
  0x10   : > { %p708_p10 = pnand %p707_p9, %p42_p1  ;;  %s168_s9 = sshll.u32 %s933_s8, 4  ;;  %s169_s9 = int_to_ptr.vmem [resolvable:$true] %s168_s9 }
  0x11   : > { %s28_s11 = sadd.s32 1, %s924_s17  ;;  %s25_s12 = ssub.s32 %s928_s18, %s1023_s10 }
  0x12   : > { %710 = dma.hbm_to_vmem [thread:$0]  (!%p708_p10), %s153_s25, 6144, %s155_s28, [#allocation6], %s931_s6, %s931_s6, %s932_s7  }
  0x13   : > { %713 = dma.hbm_to_vmem [thread:$0]  (!%p708_p10), %s167_s5, 6144, %s169_s9, [#allocation6], %s931_s6, %s931_s6, %s932_s7  }
  0x14   : > { %p35_p12 = scmp.ne.s32.totalorder %s924_s17, %s920_s16  ;;  %p26_p13 = scmp.eq.s32.totalorder %s25_s12, 0 }
  0x15   : > { %p36_p0 = scmp.eq.s32.totalorder %s928_s18, 0  ;;  %p724_p5 = scmp.lt.s32.totalorder %s928_s18, 2 }
  0x16   : > { %p1033_p3 = por %p128_p2, %p35_p12  ;;  %s185_s20 = sand.u32 1, %s924_s17  }
  0x17   : > { %s1039_s14 = scalar_select %p26_p13, %s924_s17, %s28_s11  }
  0x18   : > { %p37_p7 = por %p36_p0, %p35_p12  ;;  %s642_s23 = sshll.u32 %s185_s20, 4 }
  0x19   : > { %s661_s24 = sshll.u32 %s928_s18, 4  ;;  %s189_s29 = scalar_lea.vmem [#allocation2], %s642_s23 }
  0x1a   : > { %s194_s28 = scalar_lea.hbm %s1152_s0, %s661_s24  ;;  %s197_s30 = sshll.u32 %s189_s29, 4  ;;  %s198_s30 = int_to_ptr.vmem [resolvable:$true] %s197_s30 }
  0x1b   : > { %s195_s5 = sshll.u32 %s194_s28, 4  ;;  %p1046_p2 = pnand %p724_p5, %p37_p7  ;;  %s196_s5 = int_to_ptr.hbm [resolvable:$true] %s195_s5 }
  0x1c   : > { %s186_s9 = scalar_lea.sflag [#allocation3], %s185_s20  ;;  %s828_s11 = sshra.s32 %s196_s5, 4  ;;  %s829_s11 = int_to_ptr.hbm [resolvable:$true] %s828_s11 }
  0x1d   : > { %s830_s12 = scalar_lea.hbm %s829_s11, 16  ;;  %p832_p10 = pneg %p1046_p2 }
  0x1e   : > { %p831_p9 = scmp.ne.s32.totalorder %s829_s11, %s830_s12  ;;  %s835_s25 = scalar_lea.hbm %s1152_s0, 32 }
  0x1f   : > { %p836_p0 = scmp.lt.s32.totalorder %s829_s11, %s1152_s0  ;;  %p837_p5 = scmp.lt.s32.totalorder %s835_s25, %s830_s12 }
  0x20   : > { %p833_p12 = pnand %p832_p10, %p831_p9 }
  0x21   : > { %p838_p7 = por %p837_p5, %p836_p0 }
  0x22   : > { %p834_p13 = pneg %p833_p12 }
  0x24   : > { %p839_p11 = pnand %p838_p7, %p834_p13 }
  0x26   : > { %842 = shalt.err (!%p839_p11)
}
  0x27   : > { %717 = dma.hbm_to_vmem [thread:$0]  (!%p1046_p2), %s196_s5, 256, %s198_s30, %s186_s9, %s931_s6, %s931_s6, %s932_s7  }
  0x28   : > { %209 = sbr.rel (%p1004_p8) target bundleno = 377 (0x179), region = 36  ;;  %s1066_s20 = sand.u32 (!%p1004_p8), 1, %s920_s16  }
  0x29   : > { %s646_s29 = sshll.u32 (!%p1004_p8), %s1066_s20, 4  ;;  %s212_s11 = scalar_lea.sflag (!%p1004_p8), [#allocation3], %s1066_s20 }
  0x2a   : > { %s1072_s12 = scalar_lea.vmem (!%p1004_p8), [#allocation2], %s646_s29 }
  0x2d   : > { %903 = dma.done.wait (%p991_p4), %s212_s11, 256  }
  0x2e   : > { %905 = vsyncadd (%p991_p4), %s212_s11, 4294967040 }
  0x2f   : > { %907 = dma.done.wait (%p42_p1), [#allocation6], 12288  }
  0x30   : > { %909 = vsyncadd (%p42_p1), [#allocation6], 4294955008  ;;  %v316_v0 = vld [vmem:[#allocation5 + $0x178] sm:$0xff]  ;;  %v315_v2 = vld [vmem:[#allocation5 + $0x170] sm:$0xff]  ;;  %vm262_vm0 = vcmask 1046528   ;;  %vm255_vm1 = vcmask 1040384  }
  0x31   : > { %v284_v1 = vld [vmem:[#allocation5 + $0x78] sm:$0xff]  ;;  %365 = vmatpush.msra.mxu2 %v316_v0  ;;  %v283_v3 = vld [vmem:[#allocation5 + $0x70] sm:$0xff]  ;;  %v314_v5 = vld [vmem:[#allocation5 + $0x168] sm:$0xff]  ;;  %s250_s30 = scalar_lea.vmem [#allocation8], %s646_s29  ;;  %s662_s5 = sshll.u32 %s982_s19, 4 }
  0x32   : > { %319 = vmatpush.msra.mxu0 %v284_v1  ;;  %v300_v4 = vld [vmem:[#allocation5 + $0xf8] sm:$0xff]  ;;  %v282_v6 = vld [vmem:[#allocation5 + $0x68] sm:$0xff]  ;;  %v299_v7 = vld [vmem:[#allocation5 + $0xf0] sm:$0xff]  ;;  %s541_s24 = scalar_lea.hbm %s1156_s4, %s662_s5  ;;  %s542_s23 = sshll.u32 %s250_s30, 4  ;;  %s543_s23 = int_to_ptr.vmem [resolvable:$true] %s542_s23 }
  0x33   : > { %342 = vmatpush.msra.mxu1 %v300_v4  ;;  %366 = vmatpush.msra.mxu2 %v315_v2  ;;  %v298_v8 = vld [vmem:[#allocation5 + $0xe8] sm:$0xff]  ;;  %v313_v9 = vld [vmem:[#allocation5 + $0x160] sm:$0xff]  ;;  %v312_v12 = vld [vmem:[#allocation5 + $0x158] sm:$0xff]  ;;  %s544_s25 = sshll.u32 %s541_s24, 4  ;;  %s530_s27 = scalar_lea.sflag [#allocation4], %s1066_s20  ;;  %s545_s25 = int_to_ptr.hbm [resolvable:$true] %s544_s25 }
  0x34   : > { %320 = vmatpush.msra.mxu0 %v283_v3  ;;  %v281_v10 = vld [vmem:[#allocation5 + $0x60] sm:$0xff]  ;;  %v280_v13 = vld [vmem:[#allocation5 + $0x58] sm:$0xff]  ;;  %v311_v15 = vld [vmem:[#allocation5 + $0x150] sm:$0xff]  ;;  %s872_s28 = sshra.s32 %s545_s25, 4  ;;  %s873_s28 = int_to_ptr.hbm [resolvable:$true] %s872_s28 }
  0x35   : > { %343 = vmatpush.msra.mxu1 %v299_v7  ;;  %367 = vmatpush.msra.mxu2 %v314_v5  ;;  %v297_v11 = vld [vmem:[#allocation5 + $0xe0] sm:$0xff]  ;;  %v296_v14 = vld [vmem:[#allocation5 + $0xd8] sm:$0xff]  ;;  %v279_v16 = vld [vmem:[#allocation5 + $0x50] sm:$0xff]  ;;  %s874_s19 = scalar_lea.hbm %s873_s28, 16  ;;  %p879_p11 = scmp.lt.s32.totalorder %s873_s28, %s1156_s4 }
  0x36   : > { %321 = vmatpush.msra.mxu0 %v282_v6  ;;  %v295_v17 = vld [vmem:[#allocation5 + $0xd0] sm:$0xff]  ;;  %v310_v18 = vld [vmem:[#allocation5 + $0x148] sm:$0xff]  ;;  %v309_v21 = vld [vmem:[#allocation5 + $0x140] sm:$0xff]  ;;  %p875_p1 = scmp.ne.s32.totalorder %s873_s28, %s874_s19 }
  0x37   : > { %344 = vmatpush.msra.mxu1 %v298_v8  ;;  %368 = vmatpush.msra.mxu2 %v313_v9  ;;  %v278_v19 = vld [vmem:[#allocation5 + $0x48] sm:$0xff]  ;;  %v277_v22 = vld [vmem:[#allocation5 + $0x40] sm:$0xff]  ;;  %v308_v24 = vld [vmem:[#allocation5 + $0x138] sm:$0xff] }
  0x38   : > { %322 = vmatpush.msra.mxu0 %v281_v10  ;;  %v294_v20 = vld [vmem:[#allocation5 + $0xc8] sm:$0xff]  ;;  %v293_v23 = vld [vmem:[#allocation5 + $0xc0] sm:$0xff]  ;;  %v276_v25 = vld [vmem:[#allocation5 + $0x38] sm:$0xff]  ;;  %p876_p4 = pnand %p875_p1, %p1033_p3 }
  0x39   : > { %345 = vmatpush.msra.mxu1 %v297_v11  ;;  %369 = vmatpush.msra.mxu2 %v312_v12  ;;  %v292_v26 = vld [vmem:[#allocation5 + $0xb8] sm:$0xff]  ;;  %v307_v27 = vld [vmem:[#allocation5 + $0x130] sm:$0xff]  ;;  %v306_v32 = vld [vmem:[#allocation5 + $0x128] sm:$0xff] }
  0x3a   : > { %323 = vmatpush.msra.mxu0 %v280_v13  ;;  %v275_v28 = vld [vmem:[#allocation5 + $0x30] sm:$0xff]  ;;  %v419_v30 = vld [vmem:[#allocation7 + $0x78] sm:$0xff]  ;;  %v274_v33 = vld [vmem:[#allocation5 + $0x28] sm:$0xff]  ;;  %p877_p8 = pneg %p876_p4 }
  0x3b   : > { %346 = vmatpush.msra.mxu1 %v296_v14  ;;  %370 = vmatpush.msra.mxu2 %v311_v15  ;;  %v291_v29 = vld [vmem:[#allocation5 + $0xb0] sm:$0xff]  ;;  %v290_v34 = vld [vmem:[#allocation5 + $0xa8] sm:$0xff]  ;;  %v305_v36 = vld [vmem:[#allocation5 + $0x120] sm:$0xff] }
  0x3c   : > { %324 = vmatpush.msra.mxu0 %v279_v16  ;;  %v418_v31 = vld [vmem:[#allocation7 + $0x70] sm:$0xff]  ;;  %454 = vmatpush.msra.mxu3 %v419_v30  ;;  %v417_v35 = vld [vmem:[#allocation7 + $0x68] sm:$0xff]  ;;  %v273_v37 = vld [vmem:[#allocation5 + $0x20] sm:$0xff] }
  0x3d   : > { %347 = vmatpush.msra.mxu1 %v295_v17  ;;  %371 = vmatpush.msra.mxu2 %v310_v18  ;;  %v304_v38 = vld [vmem:[#allocation5 + $0x118] sm:$0xff]  ;;  %v289_v39 = vld [vmem:[#allocation5 + $0xa0] sm:$0xff]  ;;  %v303_v46 = vld [vmem:[#allocation5 + $0x110] sm:$0xff] }
  0x3e   : > { %325 = vmatpush.msra.mxu0 %v278_v19  ;;  %455 = vmatpush.msra.mxu3 %v418_v31  ;;  %v416_v40 = vld [vmem:[#allocation7 + $0x60] sm:$0xff]  ;;  %v272_v41 = vld [vmem:[#allocation5 + $0x18] sm:$0xff]  ;;  %v271_v47 = vld [vmem:[#allocation5 + $0x10] sm:$0xff] }
  0x3f   : > { %348 = vmatpush.msra.mxu1 %v294_v20  ;;  %372 = vmatpush.msra.mxu2 %v309_v21  ;;  %v1083_v42 = vld [vmem:[%s1072_s12] sm:$0xff]  ;;  %v1086_v43 = vld [vmem:[%s1072_s12 + $0x8] sm:$0xff]  ;;  %vm1093_vm2 = vmneg %vm255_vm1  ;;  %s878_s12 = scalar_lea.hbm %s1156_s4, 32 }
  0x40   : > { %326 = vmatpush.msra.mxu0 %v277_v22  ;;  %456 = vmatpush.msra.mxu3 %v417_v35  ;;  %v288_v44 = vld [vmem:[#allocation5 + $0x98] sm:$0xff]  ;;  %v287_v48 = vld [vmem:[#allocation5 + $0x90] sm:$0xff]  ;;  %v263_v49 = vrot.slane %v1083_v42, 1  ;;  %v264_v50 = vrot.slane %v1086_v43, 1  ;;  %v302_v52 = vld [vmem:[#allocation5 + $0x108] sm:$0xff]  ;;  %v256_v58 = vrot.slane %v1083_v42, 7  ;;  %p880_p2 = scmp.lt.s32.totalorder %s878_s12, %s874_s19 }
  0x41   : > { %349 = vmatpush.msra.mxu1 %v293_v23  ;;  %373 = vmatpush.msra.mxu2 %v308_v24  ;;  %v415_v45 = vld [vmem:[#allocation7 + $0x58] sm:$0xff]  ;;  %v414_v51 = vld [vmem:[#allocation7 + $0x50] sm:$0xff]  ;;  %v270_v53 = vld [vmem:[#allocation5 + $0x8] sm:$0xff]  ;;  %v257_v1 = vrot.slane %v1086_v43, 7 }
  0x42   : > { %327 = vmatpush.msra.mxu0 %v276_v25  ;;  %457 = vmatpush.msra.mxu3 %v416_v40  ;;  %v301_v54 = vld [vmem:[#allocation5 + $0x100] sm:$0xff]  ;;  %v286_v55 = vld [vmem:[#allocation5 + $0x88] sm:$0xff]  ;;  %v265_v59 = vsel %vm262_vm0, %v263_v49, %v264_v50  ;;  %v435_v62 = vld [vmem:[#allocation7 + $0xf8] sm:$0xff]  ;;  %p881_p9 = por %p880_p2, %p879_p11 }
  0x43   : > { %350 = vmatpush.msra.mxu1 %v292_v26  ;;  %374 = vmatpush.msra.mxu2 %v307_v27  ;;  %v413_v56 = vld [vmem:[#allocation7 + $0x48] sm:$0xff]  ;;  %v269_v57 = vld [vmem:[#allocation5] sm:$0xff]  ;;  %v434_v0 = vld [vmem:[#allocation7 + $0xf0] sm:$0xff]  ;;  %v258_v8 = vsel %vm255_vm1, %v256_v58, %v257_v1 }
  0x44   : > { %328 = vmatpush.msra.mxu0 %v275_v28  ;;  %458 = vmatpush.msra.mxu3 %v415_v45  ;;  %v285_v61 = vld [vmem:[#allocation5 + $0x80] sm:$0xff]  ;;  %v411_v2 = vld [vmem:[#allocation7 + $0x38] sm:$0xff]  ;;  %v433_v4 = vld [vmem:[#allocation7 + $0xe8] sm:$0xff]  ;;  %p882_p10 = pnand %p881_p9, %p877_p8 }
  0x45   : > { %351 = vmatpush.msra.mxu1 %v291_v29  ;;  %375 = vmatpush.msra.mxu2 %v306_v32  ;;  %v412_v63 = vld [vmem:[#allocation7 + $0x40] sm:$0xff]  ;;  %v451_v3 = vld [vmem:[#allocation7 + $0x178] sm:$0xff]  ;;  %v410_v5 = vld [vmem:[#allocation7 + $0x30] sm:$0xff] }
  0x46   : > { %329 = vmatpush.msra.mxu0 %v274_v33  ;;  %459 = vmatpush.msra.mxu3 %v414_v51  ;;  %v450_v6 = vld [vmem:[#allocation7 + $0x170] sm:$0xff]  ;;  %v432_v7 = vld [vmem:[#allocation7 + $0xe0] sm:$0xff]  ;;  %v409_v9 = vld [vmem:[#allocation7 + $0x28] sm:$0xff] }
  0x47   : > { %352 = vmatpush.msra.mxu1 %v290_v34  ;;  %376 = vmatpush.msra.mxu2 %v305_v36  ;;  %v431_v10 = vld [vmem:[#allocation7 + $0xd8] sm:$0xff]  ;;  %v408_v11 = vld [vmem:[#allocation7 + $0x20] sm:$0xff]  ;;  %v430_v12 = vld [vmem:[#allocation7 + $0xd0] sm:$0xff] }
  0x48   : > { %330 = vmatpush.msra.mxu0 %v273_v37  ;;  %460 = vmatpush.msra.mxu3 %v413_v56  ;;  %v449_v13 = vld [vmem:[#allocation7 + $0x168] sm:$0xff]  ;;  %v407_v14 = vld [vmem:[#allocation7 + $0x18] sm:$0xff]  ;;  %v448_v16 = vld [vmem:[#allocation7 + $0x160] sm:$0xff] }
  0x49   : > { %353 = vmatpush.msra.mxu1 %v289_v39  ;;  %377 = vmatpush.msra.mxu2 %v304_v38  ;;  %v429_v15 = vld [vmem:[#allocation7 + $0xc8] sm:$0xff]  ;;  %v406_v17 = vld [vmem:[#allocation7 + $0x10] sm:$0xff]  ;;  %v428_v18 = vld [vmem:[#allocation7 + $0xc0] sm:$0xff] }
  0x4a   : > { %331 = vmatpush.msra.mxu0 %v272_v41  ;;  %461 = vmatpush.msra.mxu3 %v412_v63  ;;  %v447_v19 = vld [vmem:[#allocation7 + $0x158] sm:$0xff]  ;;  %v405_v20 = vld [vmem:[#allocation7 + $0x8] sm:$0xff]  ;;  %v446_v22 = vld [vmem:[#allocation7 + $0x150] sm:$0xff] }
  0x4b   : > { %354 = vmatpush.msra.mxu1 %v288_v44  ;;  %378 = vmatpush.msra.mxu2 %v303_v46  ;;  %v427_v21 = vld [vmem:[#allocation7 + $0xb8] sm:$0xff]  ;;  %v404_v23 = vld [vmem:[#allocation7] sm:$0xff]  ;;  %v426_v24 = vld [vmem:[#allocation7 + $0xb0] sm:$0xff] }
  0x4c   : > { %332 = vmatpush.msra.mxu0 %v271_v47  ;;  %462 = vmatpush.msra.mxu3 %v411_v2  ;;  %v425_v25 = vld [vmem:[#allocation7 + $0xa8] sm:$0xff]  ;;  %v424_v26 = vld [vmem:[#allocation7 + $0xa0] sm:$0xff]  ;;  %v423_v28 = vld [vmem:[#allocation7 + $0x98] sm:$0xff] }
  0x4d   : > { %355 = vmatpush.msra.mxu1 %v287_v48  ;;  %379 = vmatpush.msra.mxu2 %v302_v52  ;;  %v445_v27 = vld [vmem:[#allocation7 + $0x148] sm:$0xff]  ;;  %v444_v29 = vld [vmem:[#allocation7 + $0x140] sm:$0xff]  ;;  %v422_v30 = vld [vmem:[#allocation7 + $0x90] sm:$0xff] }
  0x4e   : > { %333 = vmatpush.msra.mxu0 %v270_v53  ;;  %463 = vmatpush.msra.mxu3 %v410_v5  ;;  %v443_v31 = vld [vmem:[#allocation7 + $0x138] sm:$0xff]  ;;  %v421_v32 = vld [vmem:[#allocation7 + $0x88] sm:$0xff]  ;;  %v442_v33 = vld [vmem:[#allocation7 + $0x130] sm:$0xff] }
  0x4f   : > { %356 = vmatpush.msra.mxu1 %v286_v55  ;;  %380 = vmatpush.msra.mxu2 %v301_v54  ;;  %v420_v34 = vld [vmem:[#allocation7 + $0x80] sm:$0xff]  ;;  %v441_v35 = vld [vmem:[#allocation7 + $0x128] sm:$0xff]  ;;  %v439_v37 = vld [vmem:[#allocation7 + $0x118] sm:$0xff] }
  0x50   : > { %334 = vmatpush.msra.mxu0 %v269_v57  ;;  %381 = vmatmul.f32.vlgmr.msra.gmra.mxu2 %v265_v59  ;;  %v440_v36 = vld [vmem:[#allocation7 + $0x120] sm:$0xff]  ;;  %v438_v38 = vld [vmem:[#allocation7 + $0x110] sm:$0xff]  ;;  %v437_v39 = vld [vmem:[#allocation7 + $0x108] sm:$0xff] }
  0x51   : > { %651 = vmatmul.msk.f32.vlgmr.msra.gmra.mxu0 %vm1093_vm2, %v256_v58  ;;  %357 = vmatpush.msra.mxu1 %v285_v61  ;;  %v436_v40 = vld [vmem:[#allocation7 + $0x100] sm:$0xff] }
  0x52   : > { %477 = vmatpush.msrb.mxu0 %v435_v62  ;;  %358 = vmatmul.f32.vlgmr.msra.gmra.mxu1 %v1083_v42  ;;  %v766_v41 = vld [vmem:[%s1155_s3] ss:$0 sm:$0xff]  ;;  %v767_v60 = vld [vmem:[%s1155_s3 + $0x1] ss:$0 sm:$0xff] }
  0x53   : > { %663 = vmatpush.msrb.mxu2 %v435_v62  ;;  %500 = vmatpush.msrb.mxu1 %v451_v3 }
  0x54   : > { %478 = vmatpush.msrb.mxu0 %v434_v0  ;;  %464 = vmatpush.msra.mxu3 %v409_v9 }
  0x55   : > { %664 = vmatpush.msrb.mxu2 %v434_v0  ;;  %501 = vmatpush.msrb.mxu1 %v450_v6 }
  0x56   : > { %479 = vmatpush.msrb.mxu0 %v433_v4  ;;  %465 = vmatpush.msra.mxu3 %v408_v11 }
  0x57   : > { %665 = vmatpush.msrb.mxu2 %v433_v4  ;;  %502 = vmatpush.msrb.mxu1 %v449_v13 }
  0x58   : > { %480 = vmatpush.msrb.mxu0 %v432_v7  ;;  %652 = vmatmul.msk.f32.gmra.mxu2 %vm262_vm0, %v264_v50 }
  0x59   : > { %338 = vmatmul.f32.gmra.mxu0 %v258_v8  ;;  %666 = vmatpush.msrb.mxu2 %v432_v7 }
  0x5a   : > { %481 = vmatpush.msrb.mxu0 %v431_v10  ;;  %361 = vmatmul.f32.gmra.mxu1 %v1086_v43 }
  0x5b   : > { %667 = vmatpush.msrb.mxu2 %v431_v10  ;;  %466 = vmatpush.msra.mxu3 %v407_v14 }
  0x5c   : > { %482 = vmatpush.msrb.mxu0 %v430_v12  ;;  %503 = vmatpush.msrb.mxu1 %v448_v16 }
  0x5d   : > { %668 = vmatpush.msrb.mxu2 %v430_v12  ;;  %467 = vmatpush.msra.mxu3 %v406_v17 }
  0x5e   : > { %483 = vmatpush.msrb.mxu0 %v429_v15  ;;  %504 = vmatpush.msrb.mxu1 %v447_v19 }
  0x5f   : > { %669 = vmatpush.msrb.mxu2 %v429_v15  ;;  %468 = vmatpush.msra.mxu3 %v405_v20 }
  0x60   : > { %484 = vmatpush.msrb.mxu0 %v428_v18  ;;  %505 = vmatpush.msrb.mxu1 %v446_v22 }
  0x61   : > { %670 = vmatpush.msrb.mxu2 %v428_v18  ;;  %469 = vmatpush.msra.mxu3 %v404_v23 }
  0x62   : > { %485 = vmatpush.msrb.mxu0 %v427_v21  ;;  %506 = vmatpush.msrb.mxu1 %v445_v27 }
  0x63   : > { %679 = vmatpush.msrb.mxu3 %v451_v3  ;;  %671 = vmatpush.msrb.mxu2 %v427_v21 }
  0x64   : > { %486 = vmatpush.msrb.mxu0 %v426_v24  ;;  %507 = vmatpush.msrb.mxu1 %v444_v29 }
  0x65   : > { %680 = vmatpush.msrb.mxu3 %v450_v6  ;;  %672 = vmatpush.msrb.mxu2 %v426_v24 }
  0x66   : > { %487 = vmatpush.msrb.mxu0 %v425_v25  ;;  %508 = vmatpush.msrb.mxu1 %v443_v31 }
  0x67   : > { %681 = vmatpush.msrb.mxu3 %v449_v13  ;;  %673 = vmatpush.msrb.mxu2 %v425_v25 }
  0x68   : > { %488 = vmatpush.msrb.mxu0 %v424_v26  ;;  %509 = vmatpush.msrb.mxu1 %v442_v33 }
  0x69   : > { %682 = vmatpush.msrb.mxu3 %v448_v16  ;;  %674 = vmatpush.msrb.mxu2 %v424_v26 }
  0x6a   : > { %489 = vmatpush.msrb.mxu0 %v423_v28  ;;  %510 = vmatpush.msrb.mxu1 %v441_v35 }
  0x6b   : > { %683 = vmatpush.msrb.mxu3 %v447_v19  ;;  %675 = vmatpush.msrb.mxu2 %v423_v28 }
  0x6c   : > { %490 = vmatpush.msrb.mxu0 %v422_v30  ;;  %511 = vmatpush.msrb.mxu1 %v440_v36 }
  0x6d   : > { %684 = vmatpush.msrb.mxu3 %v446_v22  ;;  %676 = vmatpush.msrb.mxu2 %v422_v30 }
  0x6e   : > { %491 = vmatpush.msrb.mxu0 %v421_v32  ;;  %512 = vmatpush.msrb.mxu1 %v439_v37 }
  0x6f   : > { %685 = vmatpush.msrb.mxu3 %v445_v27  ;;  %677 = vmatpush.msrb.mxu2 %v421_v32 }
  0x70   : > { %492 = vmatpush.msrb.mxu0 %v420_v34  ;;  %513 = vmatpush.msrb.mxu1 %v438_v38 }
  0x71   : > { %686 = vmatpush.msrb.mxu3 %v444_v29  ;;  %678 = vmatpush.msrb.mxu2 %v420_v34 }
  0x72   : > { %514 = vmatpush.msrb.mxu1 %v437_v39 }
  0x73   : > { %687 = vmatpush.msrb.mxu3 %v443_v31 }
  0x74   : > { %515 = vmatpush.msrb.mxu1 %v436_v40 }
  0x75   : > { %688 = vmatpush.msrb.mxu3 %v442_v33 }
  0x77   : > { %689 = vmatpush.msrb.mxu3 %v441_v35 }
  0x79   : > { %690 = vmatpush.msrb.mxu3 %v440_v36 }
  0x7b   : > { %691 = vmatpush.msrb.mxu3 %v439_v37 }
  0x7d   : > { %692 = vmatpush.msrb.mxu3 %v438_v38 }
  0x7f   : > { %693 = vmatpush.msrb.mxu3 %v437_v39 }
  0x81   : > { %694 = vmatpush.msrb.mxu3 %v436_v40 }
  0xce   : > { %v336_v44 = vpop.f32.mrf.mxu0 }
  0xcf   : > { %v337_v45 = vadd.f32 %v766_v41, %v336_v44  ;;  %v359_v46 = vpop.f32.mrf.mxu1 }
  0xd1   : > { %v360_v47 = vadd.f32 %v359_v46, %v337_v45 }
  0xd3   : > { %v382_v48 = vpop.f32.mrf.mxu2 }
  0xd4   : > { %v383_v49 = vadd.f32 %v382_v48, %v360_v47 }
  0xd6   : > { %v339_v50 = vpop.f32.mrf.mxu0  ;;  %v388_v51 = vmax.f32 %v383_v49, 0.0 }
  0xd7   : > { %v340_v52 = vadd.f32 %v766_v41, %v339_v50  ;;  %v362_v53 = vpop.f32.mrf.mxu1 }
  0xd8   : > { %493 = vmatmul.f32.vlgmr.msrb.gmra.mxu0 %v388_v51  ;;  %v392_v55 = vrot.slane %v388_v51, 7  ;;  %v398_v59 = vrot.slane %v388_v51, 1 }
  0xd9   : > { %v363_v54 = vadd.f32 %v362_v53, %v340_v52 }
  0xda   : > { %654 = vmatmul.msk.f32.vlgmr.msra.gmra.mxu3 %vm1093_vm2, %v392_v55 }
  0xdb   : > { %v385_v56 = vpop.f32.mrf.mxu2 }
  0xdc   : > { %v386_v57 = vadd.f32 %v385_v56, %v363_v54 }
  0xde   : > { %v389_v58 = vmax.f32 %v386_v57, 0.0 }
  0xe0   : > { %v399_v61 = vrot.slane %v389_v58, 1  ;;  %496 = vmatmul.f32.vlgmr.msrb.gmra.mxu2 %v389_v58  ;;  %v393_v62 = vrot.slane %v389_v58, 7 }
  0xe2   : > { %v394_v63 = vsel %vm255_vm1, %v392_v55, %v393_v62  ;;  %v400_v0 = vsel %vm262_vm0, %v398_v59, %v399_v61 }
  0xe3   : > { %473 = vmatmul.f32.gmra.mxu3 %v394_v63  ;;  %516 = vmatmul.f32.vlgmr.msrb.gmra.mxu1 %v400_v0 }
  0xeb   : > { %655 = vmatmul.msk.f32.vlgmr.msrb.gmra.mxu3 %vm262_vm0, %v399_v61 }
 0x155   : > { %v494_v3 = vpop.f32.mrf.mxu0 }
 0x15d   : > { %v471_v1 = vpop.f32.mrf.mxu3 }
 0x15e   : > { %v472_v2 = vadd.f32 %v767_v60, %v471_v1 }
 0x160   : > { %v495_v4 = vadd.f32 %v494_v3, %v472_v2  ;;  %v517_v5 = vpop.f32.mrf.mxu1 }
 0x162   : > { %v518_v6 = vadd.f32 %v517_v5, %v495_v4 }
 0x163   : > { %v497_v11 = vpop.f32.mrf.mxu2 }
 0x164   : > { %v523_v7 = vadd.f32 %v518_v6, %v1083_v42 }
 0x166   : > { %v525_v8 = vmax.f32 %v523_v7, 0.0  ;;  %v474_v9 = vpop.f32.mrf.mxu3 }
 0x167   : > { %v475_v10 = vadd.f32 %v767_v60, %v474_v9 }
 0x168   : > { %527 = vst [vmem:[%s250_s30] sm:$0xff] %v525_v8 }
 0x169   : > { %v498_v12 = vadd.f32 %v497_v11, %v475_v10 }
 0x16e   : > { %v520_v13 = vpop.f32.mrf.mxu3 }
 0x16f   : > { %v521_v14 = vadd.f32 %v520_v13, %v498_v12 }
 0x171   : > { %v524_v42 = vadd.f32 %v521_v14, %v1086_v43 }
 0x173   : > { %v526_v15 = vmax.f32 %v524_v42, 0.0 }
 0x175   : > { %528 = vst [vmem:[%s250_s30 + $0x8] sm:$0xff] %v526_v15 }
 0x176   : > { %885 = shalt.err (!%p882_p10)
}
 0x177   : > { %s934_s20 = smov 128   ;;  %s935_s6 = smov 8  }
 0x178   : > { %705 = dma.vmem_to_hbm [thread:$0]  (%p1033_p3), %s543_s23, 256, %s545_s25, %s530_s27, %s934_s20, %s934_s20, %s935_s6  }
 0x179 PF: > { %s559_s7 = sand.u32 1, %s916_s15   ;;  %p1164_p12 = scmp.ge.s32.totalorder %s928_s18, 2 }
 0x17a   : > { %s560_s30 = scalar_lea.sflag [#allocation4], %s559_s7 }
 0x17b   : > { %p719_p13 = pnand %p1164_p12, %p996_p6 }
 0x17d   : > { %p720_p0 = pneg %p719_p13 }
 0x17f   : > { %911 = dma.done.wait (%p720_p0), %s560_s30, 256  }
 0x180   : > { %913 = vsyncadd (%p720_p0), %s560_s30, 4294967040  ;;  %p18_p5 = scmp.ge.s32.totalorder %s1023_s10, 4   ;;  %s1165_s15 = smov %s920_s16 }
 0x181   : > { %s1166_s16 = smov %s924_s17  ;;  %s1167_s17 = smov %s1039_s14 }
 0x182   : > { %s1168_s18 = smov %s1023_s10  ;;  %20 = sbr.rel (!%p18_p5) target bundleno = 6 (0x6), region = 89 }
 0x187   :  { %566 = vsyncpa [#allocation3], 1 }
 0x188   :  { %568 = vsyncpa [#allocation3 + $0x1], 1 }
 0x189   :  { %569 = vsyncpa [#allocation6], 1 }
 0x18a   :  { %570 = vsyncpa [#allocation4], 1 }
 0x18b   :  { %572 = vsyncpa [#allocation4 + $0x1], 1 }

</bundles_post_ra>
